<compile_context>
chip_gen: v7x
topology: tpu7x:2x2x1
jax: 0.10.0
libtpu: 0.0.40
codegen_flags: <defaults>
</compile_context>

<pallas_src>
import functools

import jax
import jax.numpy as jnp
from jax.experimental import pallas as pl
from jax.experimental.pallas import tpu as pltpu


def _round_up(a: int, m: int) -> int:
    return m * pl.cdiv(a, m)


def _choose_batch_tiling(B: int, batch_tile: int):
    """Pick (TB, B_pad, n_steps): pad batch only to a multiple of 8, balance
    grid steps, and keep >= 2 (even) steps when possible for v7x megacore."""
    B8 = _round_up(B, 8)
    n_steps = pl.cdiv(B8, batch_tile)
    if B8 >= 16:
        n_steps = max(n_steps, 2)          # let both v7x TensorCores work
    if n_steps > 1 and n_steps % 2 == 1:
        n_steps += 1                       # even step count -> balanced cores
    TB = _round_up(pl.cdiv(B8, n_steps), 8)
    B_pad = TB * n_steps
    return TB, B_pad, n_steps


def autoencoder_kernel(
    x_ref,                 # (TB, D)
    w1_ref, b1_ref,        # (D, U1), (1, U1)
    w2_ref, b2_ref,        # (U1, U2), (1, U2)
    wd1f_ref, bd1f_ref,    # (U2, HID), (1, HID)  fused decoder-1 + risk head
    wd2f_ref, bd2_ref,     # (HID, D), (1, D)     decoder-2 (risk rows zeroed)
    dec_ref,               # (TB, D)
    risk_ref,              # (TB, 1)
    *, risk_col,
):
    x = x_ref[...]

    # ---- encoder ----
    # TODO(synk): Dropout is identity in eval mode (as used by predict());
    #             train-mode stochastic dropout is not implemented here.
    h1 = jnp.dot(x, w1_ref[...], preferred_element_type=jnp.float32) + b1_ref[...]
    h1 = jnp.maximum(h1, 0.0)
    enc = jnp.dot(h1, w2_ref[...], preferred_element_type=jnp.float32) + b2_ref[...]
    enc = jnp.maximum(enc, 0.0)

    # ---- fused decoder-1 + risk head (single lane-dense MXU pass) ----
    # cols [0:U1] = decoder hidden pre-activation, col U1 = risk (bias added),
    # cols [U1+1:HID] = 0 (zero-padded weights/bias).
    h = jnp.dot(enc, wd1f_ref[...], preferred_element_type=jnp.float32) + bd1f_ref[...]

    # Risk column bypasses the ReLU (risk_regressor has no activation).
    risk_ref[...] = h[:, risk_col:risk_col + 1].astype(risk_ref.dtype)

    # ReLU everything; risk/padded columns feed zero rows of wd2f so they
    # cannot leak into the decoded output.
    d1 = jnp.maximum(h, 0.0)

    # ---- decoder-2 ----
    dec = jnp.dot(d1, wd2f_ref[...], preferred_element_type=jnp.float32) + bd2_ref[...]
    dec_ref[...] = dec.astype(dec_ref.dtype)


def prepare_fused_params(params):
    """Build fused/zero-padded weight slabs ONCE at parameter-load time.

    Keeps the per-call forward path free of pad/scatter XLA ops.
    """
    (w1, b1, w2, b2, wd1, bd1, wd2, bd2, wr, br) = params
    D, U1 = w1.shape
    U2 = w2.shape[1]
    HID = _round_up(U1 + 1, 128)   # fused decoder-1 / risk width (lane-dense)

    wd1f = jnp.zeros((U2, HID), jnp.float32)
    wd1f = wd1f.at[:, :U1].set(wd1).at[:, U1:U1 + 1].set(wr)
    bd1f = jnp.zeros((1, HID), jnp.float32)
    bd1f = bd1f.at[:, :U1].set(bd1).at[:, U1:U1 + 1].set(br)

    wd2f = jnp.zeros((HID, D), jnp.float32)
    wd2f = wd2f.at[:U1, :].set(wd2)   # risk + padded rows stay zero

    return (w1, b1, w2, b2, wd1f, bd1f, wd2f, bd2)


def baseline_autoencoder_forward(x, fused_params, *, batch_tile=2048):
    """Fused autoencoder forward as one gridded Pallas call.

    Takes pre-fused params (see prepare_fused_params).
    Returns (decoded [B, D], risk [B, 1]), matching BaselineAutoencoder.forward.
    """
    (w1, b1, w2, b2, wd1f, bd1f, wd2f, bd2) = fused_params
    B, D = x.shape
    U1 = w1.shape[1]
    U2 = w2.shape[1]
    HID = wd1f.shape[1]

    TB, B_pad, n_steps = _choose_batch_tiling(B, batch_tile)
    if B_pad != B:
        x = jnp.pad(x, ((0, B_pad - B), (0, 0)))
    grid = (n_steps,)

    def resident(arr):
        # Full-array block, constant index_map -> stays in VMEM across steps.
        # TODO(synk): add pipeline_mode=pl.Buffered(1) (weights never change)
        #             once verified on the deployment jax version; saves the
        #             unused second pipeline buffer (~100-200 KiB VMEM).
        return pl.BlockSpec(arr.shape, lambda i: (0, 0))

    in_specs = [
        pl.BlockSpec((TB, D), lambda i: (i, 0)),   # x: tiled over batch
        resident(w1), resident(b1),
        resident(w2), resident(b2),
        resident(wd1f), resident(bd1f),
        resident(wd2f), resident(bd2),
    ]
    out_specs = (
        pl.BlockSpec((TB, D), lambda i: (i, 0)),   # decoded
        pl.BlockSpec((TB, 1), lambda i: (i, 0)),   # risk
    )
    out_shape = (
        jax.ShapeDtypeStruct((B_pad, D), jnp.float32),
        jax.ShapeDtypeStruct((B_pad, 1), jnp.float32),
    )

    flops = 2 * B_pad * (D * U1 + U1 * U2 + U2 * HID + HID * D)
    bytes_accessed = 4 * (
        B_pad * D                      # x in
        + B_pad * D + B_pad            # decoded + risk out
        + D * U1 + U1 + U1 * U2 + U2   # encoder weights/biases
        + U2 * HID + HID + HID * D + D # fused decoder weights/biases
    )
    cost = pl.CostEstimate(flops=int(flops), transcendentals=0,
                           bytes_accessed=int(bytes_accessed))

    decoded, risk = pl.pallas_call(
        functools.partial(autoencoder_kernel, risk_col=U1),
        out_shape=out_shape,
        grid=grid,
        in_specs=in_specs,
        out_specs=out_specs,
        compiler_params=pltpu.CompilerParams(
            dimension_semantics=("parallel",)),
        cost_estimate=cost,
    )(x, w1, b1, w2, b2, wd1f, bd1f, wd2f, bd2)

    return decoded[:B], risk[:B]


def init_params(key, input_shape, num_ae_units1, num_ae_units2):
    """Deterministic init mimicking torch.nn.Linear's U(-1/sqrt(fan_in), ...).

    Weights are stored as (in, out) so the kernel computes x @ W + b.
    """
    def linear(k, fan_in, fan_out):
        kw, kb = jax.random.split(k)
        bound = 1.0 / jnp.sqrt(float(fan_in))
        w = jax.random.uniform(kw, (fan_in, fan_out), jnp.float32, -bound, bound)
        b = jax.random.uniform(kb, (1, fan_out), jnp.float32, -bound, bound)
        return w, b

    keys = jax.random.split(key, 5)
    w1, b1 = linear(keys[0], input_shape, num_ae_units1)       # enc Linear 1
    w2, b2 = linear(keys[1], num_ae_units1, num_ae_units2)     # enc Linear 2
    wd1, bd1 = linear(keys[2], num_ae_units2, num_ae_units1)   # dec Linear 1
    wd2, bd2 = linear(keys[3], num_ae_units1, input_shape)     # dec Linear 2
    wr, br = linear(keys[4], num_ae_units2, 1)                 # risk regressor
    return (w1, b1, w2, b2, wd1, bd1, wd2, bd2, wr, br)


def reference_forward(x, params):
    """Pure-JAX reference (unfused weights) for correctness checking."""
    (w1, b1, w2, b2, wd1, bd1, wd2, bd2, wr, br) = params
    h1 = jnp.maximum(x @ w1 + b1, 0.0)
    enc = jnp.maximum(h1 @ w2 + b2, 0.0)
    risk = enc @ wr + br
    d1 = jnp.maximum(enc @ wd1 + bd1, 0.0)
    dec = d1 @ wd2 + bd2
    return dec, risk


if __name__ == "__main__":
    # Small shapes consistent with the module: flat-feature input.
    B = 8              # batch
    INPUT_SHAPE = 32   # input_shape
    U1 = 64            # num_ae_units1
    U2 = 16            # num_ae_units2

    key = jax.random.PRNGKey(0)
    kx, kp = jax.random.split(key)
    x = jax.random.normal(kx, (B, INPUT_SHAPE), jnp.float32)
    params = init_params(kp, INPUT_SHAPE, U1, U2)

    # Fused weight slabs built once (hoisted out of the per-call path).
    fused_params = prepare_fused_params(params)

    fwd = jax.jit(baseline_autoencoder_forward)
    decoded, risk = fwd(x, fused_params)
    decoded = jax.block_until_ready(decoded)
    risk = jax.block_until_ready(risk)

    # Sanity check against pure-JAX reference.
    ref_dec, ref_risk = reference_forward(x, params)
    assert decoded.shape == (B, INPUT_SHAPE)
    assert risk.shape == (B, 1)
    assert jnp.allclose(decoded, ref_dec, atol=1e-5, rtol=1e-5)
    assert jnp.allclose(risk, ref_risk, atol=1e-5, rtol=1e-5)

    print("KERNEL_OK")
</pallas_src>

<mosaic_0001>
module attributes {stable_mosaic.version = 11 : i64} {
  func.func @autoencoder_kernel(%arg0: i32, %arg1: memref<8x32xf32, #tpu.memory_space<vmem>>, %arg2: memref<32x64xf32, #tpu.memory_space<vmem>>, %arg3: memref<1x64xf32, #tpu.memory_space<vmem>>, %arg4: memref<64x16xf32, #tpu.memory_space<vmem>>, %arg5: memref<1x16xf32, #tpu.memory_space<vmem>>, %arg6: memref<16x128xf32, #tpu.memory_space<vmem>>, %arg7: memref<1x128xf32, #tpu.memory_space<vmem>>, %arg8: memref<128x32xf32, #tpu.memory_space<vmem>>, %arg9: memref<1x32xf32, #tpu.memory_space<vmem>>, %arg10: memref<8x32xf32, #tpu.memory_space<vmem>>, %arg11: memref<8x1xf32, #tpu.memory_space<vmem>>) attributes {dimension_semantics = [#tpu.dimension_semantics<parallel>], iteration_bounds = array<i64: 1>, scalar_prefetch = 0 : i64, scratch_operands = 0 : i64, tpu.core_type = #tpu.core_type<tc>, window_params = [{transform_indices = @transform_0, window_bounds = array<i64: 8, 32>}, {pipeline_mode = #tpu.pipeline_mode<synchronous>, transform_indices = @transform_1, window_bounds = array<i64: 32, 64>}, {pipeline_mode = #tpu.pipeline_mode<synchronous>, transform_indices = @transform_2, window_bounds = array<i64: 1, 64>}, {pipeline_mode = #tpu.pipeline_mode<synchronous>, transform_indices = @transform_3, window_bounds = array<i64: 64, 16>}, {pipeline_mode = #tpu.pipeline_mode<synchronous>, transform_indices = @transform_4, window_bounds = array<i64: 1, 16>}, {pipeline_mode = #tpu.pipeline_mode<synchronous>, transform_indices = @transform_5, window_bounds = array<i64: 16, 128>}, {pipeline_mode = #tpu.pipeline_mode<synchronous>, transform_indices = @transform_6, window_bounds = array<i64: 1, 128>}, {pipeline_mode = #tpu.pipeline_mode<synchronous>, transform_indices = @transform_7, window_bounds = array<i64: 128, 32>}, {pipeline_mode = #tpu.pipeline_mode<synchronous>, transform_indices = @transform_8, window_bounds = array<i64: 1, 32>}, {transform_indices = @transform_9, window_bounds = array<i64: 8, 32>}, {transform_indices = @transform_10, window_bounds = array<i64: 8, 1>}]} {
    %c0 = arith.constant 0 : index
    %c0_0 = arith.constant 0 : index
    %0 = vector.load %arg1[%c0, %c0_0] : memref<8x32xf32, #tpu.memory_space<vmem>>, vector<8x32xf32>
    %c0_1 = arith.constant 0 : index
    %c0_2 = arith.constant 0 : index
    %1 = vector.load %arg2[%c0_1, %c0_2] : memref<32x64xf32, #tpu.memory_space<vmem>>, vector<32x64xf32>
    %cst = arith.constant dense<0.000000e+00> : vector<8x64xf32>
    %2 = tpu.matmul %0, %1, %cst {dimension_numbers = #tpu.dot_dimension_numbers<[1], [0], [0], [1], [0, 0, 1, 1], [], []>} : vector<8x32xf32>, vector<32x64xf32>, vector<8x64xf32> -> vector<8x64xf32>
    %c0_3 = arith.constant 0 : index
    %c0_4 = arith.constant 0 : index
    %3 = vector.load %arg3[%c0_3, %c0_4] : memref<1x64xf32, #tpu.memory_space<vmem>>, vector<1x64xf32>
    %4 = vector.broadcast %3 : vector<1x64xf32> to vector<8x64xf32>
    %5 = arith.addf %2, %4 : vector<8x64xf32>
    %cst_5 = arith.constant 0.000000e+00 : f32
    %6 = vector.broadcast %cst_5 : f32 to vector<8x64xf32>
    %7 = arith.maximumf %5, %6 : vector<8x64xf32>
    %c0_6 = arith.constant 0 : index
    %c0_7 = arith.constant 0 : index
    %8 = vector.load %arg4[%c0_6, %c0_7] : memref<64x16xf32, #tpu.memory_space<vmem>>, vector<64x16xf32>
    %cst_8 = arith.constant dense<0.000000e+00> : vector<8x16xf32>
    %9 = tpu.matmul %7, %8, %cst_8 {dimension_numbers = #tpu.dot_dimension_numbers<[1], [0], [0], [1], [0, 0, 1, 1], [], []>} : vector<8x64xf32>, vector<64x16xf32>, vector<8x16xf32> -> vector<8x16xf32>
    %c0_9 = arith.constant 0 : index
    %c0_10 = arith.constant 0 : index
    %10 = vector.load %arg5[%c0_9, %c0_10] : memref<1x16xf32, #tpu.memory_space<vmem>>, vector<1x16xf32>
    %11 = vector.broadcast %10 : vector<1x16xf32> to vector<8x16xf32>
    %12 = arith.addf %9, %11 : vector<8x16xf32>
    %cst_11 = arith.constant 0.000000e+00 : f32
    %13 = vector.broadcast %cst_11 : f32 to vector<8x16xf32>
    %14 = arith.maximumf %12, %13 : vector<8x16xf32>
    %c0_12 = arith.constant 0 : index
    %c0_13 = arith.constant 0 : index
    %15 = vector.load %arg6[%c0_12, %c0_13] : memref<16x128xf32, #tpu.memory_space<vmem>>, vector<16x128xf32>
    %cst_14 = arith.constant dense<0.000000e+00> : vector<8x128xf32>
    %16 = tpu.matmul %14, %15, %cst_14 {dimension_numbers = #tpu.dot_dimension_numbers<[1], [0], [0], [1], [0, 0, 1, 1], [], []>} : vector<8x16xf32>, vector<16x128xf32>, vector<8x128xf32> -> vector<8x128xf32>
    %c0_15 = arith.constant 0 : index
    %c0_16 = arith.constant 0 : index
    %17 = vector.load %arg7[%c0_15, %c0_16] : memref<1x128xf32, #tpu.memory_space<vmem>>, vector<1x128xf32>
    %18 = vector.broadcast %17 : vector<1x128xf32> to vector<8x128xf32>
    %19 = arith.addf %16, %18 : vector<8x128xf32>
    %20 = vector.extract_strided_slice %19 {offsets = [0, 64], sizes = [8, 1], strides = [1, 1]} : vector<8x128xf32> to vector<8x1xf32>
    %c0_17 = arith.constant 0 : index
    %c0_18 = arith.constant 0 : index
    %21 = vector.load %arg11[%c0_17, %c0_18] : memref<8x1xf32, #tpu.memory_space<vmem>>, vector<8x1xf32>
    tpu.vector_store %arg11[%c0_17, %c0_18], %20 {strides = array<i32>} : memref<8x1xf32, #tpu.memory_space<vmem>>, vector<8x1xf32>,
    %cst_19 = arith.constant 0.000000e+00 : f32
    %22 = vector.broadcast %cst_19 : f32 to vector<8x128xf32>
    %23 = arith.maximumf %19, %22 : vector<8x128xf32>
    %c0_20 = arith.constant 0 : index
    %c0_21 = arith.constant 0 : index
    %24 = vector.load %arg8[%c0_20, %c0_21] : memref<128x32xf32, #tpu.memory_space<vmem>>, vector<128x32xf32>
    %cst_22 = arith.constant dense<0.000000e+00> : vector<8x32xf32>
    %25 = tpu.matmul %23, %24, %cst_22 {dimension_numbers = #tpu.dot_dimension_numbers<[1], [0], [0], [1], [0, 0, 1, 1], [], []>} : vector<8x128xf32>, vector<128x32xf32>, vector<8x32xf32> -> vector<8x32xf32>
    %c0_23 = arith.constant 0 : index
    %c0_24 = arith.constant 0 : index
    %26 = vector.load %arg9[%c0_23, %c0_24] : memref<1x32xf32, #tpu.memory_space<vmem>>, vector<1x32xf32>
    %27 = vector.broadcast %26 : vector<1x32xf32> to vector<8x32xf32>
    %28 = arith.addf %25, %27 : vector<8x32xf32>
    %c0_25 = arith.constant 0 : index
    %c0_26 = arith.constant 0 : index
    %29 = vector.load %arg10[%c0_25, %c0_26] : memref<8x32xf32, #tpu.memory_space<vmem>>, vector<8x32xf32>
    tpu.vector_store %arg10[%c0_25, %c0_26], %28 {strides = array<i32>} : memref<8x32xf32, #tpu.memory_space<vmem>>, vector<8x32xf32>,
    return
  }
  func.func @transform_0(%arg0: i32) -> (i32, i32) {
    %c0_i32 = arith.constant 0 : i32
    %c0_i32_0 = arith.constant 0 : i32
    return %arg0, %c0_i32 : i32, i32
  }
  func.func @transform_1(%arg0: i32) -> (i32, i32) {
    %c0_i32 = arith.constant 0 : i32
    %c0_i32_0 = arith.constant 0 : i32
    %c0_i32_1 = arith.constant 0 : i32
    return %c0_i32, %c0_i32_0 : i32, i32
  }
  func.func @transform_2(%arg0: i32) -> (i32, i32) {
    %c0_i32 = arith.constant 0 : i32
    %c0_i32_0 = arith.constant 0 : i32
    %c0_i32_1 = arith.constant 0 : i32
    return %c0_i32, %c0_i32_0 : i32, i32
  }
  func.func @transform_3(%arg0: i32) -> (i32, i32) {
    %c0_i32 = arith.constant 0 : i32
    %c0_i32_0 = arith.constant 0 : i32
    %c0_i32_1 = arith.constant 0 : i32
    return %c0_i32, %c0_i32_0 : i32, i32
  }
  func.func @transform_4(%arg0: i32) -> (i32, i32) {
    %c0_i32 = arith.constant 0 : i32
    %c0_i32_0 = arith.constant 0 : i32
    %c0_i32_1 = arith.constant 0 : i32
    return %c0_i32, %c0_i32_0 : i32, i32
  }
  func.func @transform_5(%arg0: i32) -> (i32, i32) {
    %c0_i32 = arith.constant 0 : i32
    %c0_i32_0 = arith.constant 0 : i32
    %c0_i32_1 = arith.constant 0 : i32
    return %c0_i32, %c0_i32_0 : i32, i32
  }
  func.func @transform_6(%arg0: i32) -> (i32, i32) {
    %c0_i32 = arith.constant 0 : i32
    %c0_i32_0 = arith.constant 0 : i32
    %c0_i32_1 = arith.constant 0 : i32
    return %c0_i32, %c0_i32_0 : i32, i32
  }
  func.func @transform_7(%arg0: i32) -> (i32, i32) {
    %c0_i32 = arith.constant 0 : i32
    %c0_i32_0 = arith.constant 0 : i32
    %c0_i32_1 = arith.constant 0 : i32
    return %c0_i32, %c0_i32_0 : i32, i32
  }
  func.func @transform_8(%arg0: i32) -> (i32, i32) {
    %c0_i32 = arith.constant 0 : i32
    %c0_i32_0 = arith.constant 0 : i32
    %c0_i32_1 = arith.constant 0 : i32
    return %c0_i32, %c0_i32_0 : i32, i32
  }
  func.func @transform_9(%arg0: i32) -> (i32, i32) {
    %c0_i32 = arith.constant 0 : i32
    %c0_i32_0 = arith.constant 0 : i32
    return %arg0, %c0_i32 : i32, i32
  }
  func.func @transform_10(%arg0: i32) -> (i32, i32) {
    %c0_i32 = arith.constant 0 : i32
    %c0_i32_0 = arith.constant 0 : i32
    return %arg0, %c0_i32 : i32, i32
  }
}

</mosaic_0001>

<bundles_post_ra>
// kernel: baseline_autoencoder_forward.1
= control target key start
LH: loop header
LB: loop body
LE: loop exit
PB: predicated region body
PF: predicated region fallthrough
CT: control target
= control target key end

     0   :  { %v601_v3 = vmov 0.0|0.0   ;;  %vm602_vm0 = vmmov 0   ;;  %v603_v6 = vmov 0.0   ;;  %s802_s0 = inlined_call_operand.vmem [shape: f32[8,32], index: 0, kind: input, shape index: {}]   ;;  %s803_s1 = inlined_call_operand.vmem [shape: f32[32,64], index: 1, kind: input, shape index: {}]   ;;  %s804_s2 = inlined_call_operand.vmem [shape: f32[1,64], index: 2, kind: input, shape index: {}]   ;;  %s805_s3 = inlined_call_operand.vmem [shape: f32[64,16], index: 3, kind: input, shape index: {}]   ;;  %s806_s4 = inlined_call_operand.vmem [shape: f32[1,16], index: 4, kind: input, shape index: {}]   ;;  %s807_s5 = inlined_call_operand.vmem [shape: f32[16,128], index: 5, kind: input, shape index: {}]   ;;  %s808_s6 = inlined_call_operand.vmem [shape: f32[1,128], index: 6, kind: input, shape index: {}]   ;;  %s809_s7 = inlined_call_operand.vmem [shape: f32[128,32], index: 7, kind: input, shape index: {}]   ;;  %s810_s8 = inlined_call_operand.vmem [shape: f32[1,32], index: 8, kind: input, shape index: {}]   ;;  %s811_s9 = inlined_call_operand.hbm [shape: f32[8,32], index: 9, kind: output, shape index: {0}]   ;;  %s812_s10 = inlined_call_operand.vmem [shape: f32[8,1], index: 10, kind: output, shape index: {1}]  }
   0x1   :  { %v36_v0 = vld [vmem:[%s803_s1] sm:$0xff]  ;;  %v37_v1 = vld [vmem:[%s803_s1 + $0x8] sm:$0xff]  ;;  %v38_v2 = vld [vmem:[%s803_s1 + $0x10] sm:$0xff]  ;;  %527 = vmatprep.subr.bf16.mxu1 %v601_v3  ;;  %463 = vmatprep.mubr.msk.f32.mxu1 %vm602_vm0, %v603_v6 }
   0x2   :  { %v528_v4 = vpack.c.bf16 %v37_v1, %v36_v0  ;;  %v39_v5 = vld [vmem:[%s803_s1 + $0x18] sm:$0xff]  ;;  %548 = vmatprep.subr.bf16.mxu0 %v601_v3  ;;  %524 = vmatprep.mubr.msk.f32.mxu0 %vm602_vm0, %v603_v6  ;;  %v122_v8 = vld [vmem:[%s805_s3] sm:$0xff]  ;;  %v123_v9 = vld [vmem:[%s805_s3 + $0x8] sm:$0xff] }
   0x3   :  { %v531_v7 = vpack.c.bf16 %v39_v5, %v38_v2 }
   0x4   :  { %529 = vmatpush3.bf16.msra.mxu1 %v528_v4 }
   0x5   :  { %530 = vmatprep.subr.bf16.mxu1 %v601_v3 }
   0x6   :  { %16 = vsyncpa [#allocation3], 0  ;;  %v35_v10 = vld [vmem:[%s802_s0] sm:$0xff]  ;;  %vm47_vm1 = vcmask 261120   ;;  %v534_v11 = vpack.c.bf16 %v123_v9, %v122_v8  ;;  %v124_v12 = vld [vmem:[%s805_s3 + $0x10] sm:$0xff]  ;;  %vm137_vm2 = vcmask 523264  }
   0x7   :  { %v125_v13 = vld [vmem:[%s805_s3 + $0x18] sm:$0xff]  ;;  %v126_v15 = vld [vmem:[%s805_s3 + $0x20] sm:$0xff]  ;;  %v127_v16 = vld [vmem:[%s805_s3 + $0x28] sm:$0xff]  ;;  %vm221_vm3 = vcmask 130048   ;;  %vm299_vm4 = vcmask 7168   ;;  %s605_s12 = smov [#allocation2]  }
   0x8   :  { %532 = vmatpush3.bf16.msra.mxu1 %v531_v7  ;;  %v537_v14 = vpack.c.bf16 %v125_v13, %v124_v12  ;;  %v540_v17 = vpack.c.bf16 %v127_v16, %v126_v15  ;;  %v128_v18 = vld [vmem:[%s805_s3 + $0x30] sm:$0xff]  ;;  %v129_v19 = vld [vmem:[%s805_s3 + $0x38] sm:$0xff]  ;;  %v414_v21 = vld [vmem:[%s804_s2] ss:$0 sm:$0xff]  ;;  %s402_s13 = sshll.u32 %s605_s12, 4  ;;  %s403_s13 = int_to_ptr.vmem [resolvable:$true] %s402_s13 }
   0x9   :  { %533 = vmatprep.subr.bf16.mxu1 %v601_v3  ;;  %v543_v20 = vpack.c.bf16 %v129_v19, %v128_v18  ;;  %v212_v26 = vld [vmem:[%s807_s5] sm:$0xff]  ;;  %v213_v27 = vld [vmem:[%s807_s5 + $0x8] sm:$0xff]  ;;  %v304_v31 = vld [vmem:[%s809_s7 + $0x10] sm:$0xff]  ;;  %p582_p1 = scmp.lt.s32.totalorder %s403_s13, %s403_s13 }
   0xa   :  { %v546_v28 = vpack.c.bf16 %v213_v27, %v212_v26  ;;  %v302_v29 = vld [vmem:[%s809_s7] sm:$0xff]  ;;  %v303_v30 = vld [vmem:[%s809_s7 + $0x8] sm:$0xff]  ;;  %v305_v33 = vld [vmem:[%s809_s7 + $0x18] sm:$0xff] }
   0xb   :  { %464 = vmatmul.mubr.msk.f32.vlgmr.msra.gmra.mrb[0].mxu1 %vm47_vm1, %v35_v10  ;;  %v549_v32 = vpack.c.bf16 %v303_v30, %v302_v29  ;;  %v552_v34 = vpack.c.bf16 %v305_v33, %v304_v31  ;;  %v306_v35 = vld [vmem:[%s809_s7 + $0x20] sm:$0xff]  ;;  %v307_v36 = vld [vmem:[%s809_s7 + $0x28] sm:$0xff]  ;;  %v308_v38 = vld [vmem:[%s809_s7 + $0x30] sm:$0xff] }
   0xc   :  { %535 = vmatpush3.bf16.msra.mxu1 %v534_v11  ;;  %482 = vmatprep.mubr.msk.f32.mxu1 %vm602_vm0, %v603_v6  ;;  %v555_v37 = vpack.c.bf16 %v307_v36, %v306_v35  ;;  %v309_v39 = vld [vmem:[%s809_s7 + $0x38] sm:$0xff]  ;;  %v310_v41 = vld [vmem:[%s809_s7 + $0x40] sm:$0xff]  ;;  %v311_v42 = vld [vmem:[%s809_s7 + $0x48] sm:$0xff] }
   0xd   :  { %536 = vmatprep.subr.bf16.mxu1 %v601_v3  ;;  %550 = vmatpush3.bf16.msra.mxu0 %v549_v32  ;;  %v558_v40 = vpack.c.bf16 %v309_v39, %v308_v38  ;;  %v561_v43 = vpack.c.bf16 %v311_v42, %v310_v41  ;;  %v312_v44 = vld [vmem:[%s809_s7 + $0x50] sm:$0xff]  ;;  %v313_v45 = vld [vmem:[%s809_s7 + $0x58] sm:$0xff]  ;;  %v314_v47 = vld [vmem:[%s809_s7 + $0x60] sm:$0xff] }
   0xe   :  { %551 = vmatprep.subr.bf16.mxu0 %v601_v3  ;;  %v564_v46 = vpack.c.bf16 %v313_v45, %v312_v44  ;;  %v315_v48 = vld [vmem:[%s809_s7 + $0x68] sm:$0xff]  ;;  %v416_v50 = vld [vmem:[%s806_s4] ss:$0 sm:$0xff]  ;;  %v316_v55 = vld [vmem:[%s809_s7 + $0x70] sm:$0xff]  ;;  %s604_s4 = smov 64  }
   0xf   :  { %v567_v49 = vpack.c.bf16 %v315_v48, %v314_v47  ;;  %v317_v56 = vld [vmem:[%s809_s7 + $0x78] sm:$0xff]  ;;  %v418_v58 = vld [vmem:[%s808_s6] ss:$0 sm:$0xff]  ;;  %s577_s6 = scalar_lea.vmem %s403_s13, 128 }
  0x10   :  { %538 = vmatpush3.bf16.msra.mxu1 %v537_v14  ;;  %v570_v57 = vpack.c.bf16 %v317_v56, %v316_v55  ;;  %v420_v0 = vld [vmem:[%s810_s8] ss:$0 sm:$0xff]  ;;  %p578_p0 = scmp.ne.s32.totalorder %s403_s13, %s577_s6  ;;  %p583_p2 = scmp.lt.s32.totalorder %s577_s6, %s577_s6 }
  0x11   :  { %539 = vmatprep.subr.bf16.mxu1 %v601_v3  ;;  %553 = vmatpush3.bf16.msra.mxu0 %v552_v34 }
  0x12   :  { %554 = vmatprep.subr.bf16.mxu0 %v601_v3  ;;  %p584_p3 = por %p583_p2, %p582_p1 }
  0x14   :  { %541 = vmatpush3.bf16.msra.mxu1 %v540_v17  ;;  %p585_p4 = pnand %p584_p3, %p578_p0 }
  0x15   :  { %542 = vmatprep.subr.bf16.mxu1 %v601_v3  ;;  %556 = vmatpush3.bf16.msra.mxu0 %v555_v37 }
  0x16   :  { %557 = vmatprep.subr.bf16.mxu0 %v601_v3 }
  0x18   :  { %544 = vmatpush3.bf16.msra.mxu1 %v543_v20 }
  0x19   :  { %545 = vmatprep.subr.bf16.mxu1 %v601_v3  ;;  %559 = vmatpush3.bf16.msra.mxu0 %v558_v40 }
  0x1a   :  { %560 = vmatprep.subr.bf16.mxu0 %v601_v3 }
  0x1d   :  { %562 = vmatpush3.bf16.msra.mxu0 %v561_v43 }
  0x1e   :  { %563 = vmatprep.subr.bf16.mxu0 %v601_v3 }
  0x21   :  { %565 = vmatpush3.bf16.msra.mxu0 %v564_v46 }
  0x22   :  { %566 = vmatprep.subr.bf16.mxu0 %v601_v3 }
  0x25   :  { %568 = vmatpush3.bf16.msra.mxu0 %v567_v49 }
  0x26   :  { %569 = vmatprep.subr.bf16.mxu0 %v601_v3 }
  0x29   :  { %571 = vmatpush3.bf16.msra.mxu0 %v570_v57 }
  0xde   :  { %v117_v22 = vpop.f32.mrb[0].mxu1 }
  0xdf   :  { %v118_v23 = vadd.f32 %v414_v21, %v117_v22  ;;  %v465_v24 = vpop.f32.mrb[1].mxu1 }
  0xe1   :  { %v121_v25 = vmax.f32 %v118_v23, 0.0 }
  0xe3   :  { %483 = vmatmul.mubr.msk.f32.vlgmr.msra.gmra.mrb[2].mxu1 %vm137_vm2, %v121_v25 }
  0xe4   :  { %489 = vmatprep.mubr.msk.f32.mxu1 %vm602_vm0, %v603_v6  ;;  %547 = vmatpush3.bf16.msra.mxu1 %v546_v28 }
 0x1b6   :  { %v207_v51 = vpop.f32.mrb[2].mxu1 }
 0x1b7   :  { %v208_v52 = vadd.f32 %v416_v50, %v207_v51  ;;  %v484_v53 = vpop.f32.mrb[3].mxu1 }
 0x1b9   :  { %v211_v54 = vmax.f32 %v208_v52, 0.0 }
 0x1bb   :  { %490 = vmatmul.mubr.msk.f32.vlgmr.msra.gmra.mrb[4].mxu1 %vm221_vm3, %v211_v54 }
 0x28e   :  { %v291_v59 = vpop.f32.mrb[4].mxu1 }
 0x28f   :  { %v292_v60 = vadd.f32 %v418_v58, %v291_v59  ;;  %v491_v61 = vpop.f32.mrb[5].mxu1 }
 0x291   :  { %v301_v62 = vmax.f32 %v292_v60, 0.0  ;;  %296 = vrot.lane.b32.xlu0 %v292_v60, %s604_s4 }
 0x293   :  { %525 = vmatmul.mubr.f32.vlgmr.msra.gmra.mrb[0].mxu0 %v301_v62 }
 0x303   :  { %v297_v63 = vpop.permute.xlu0 %296 }
 0x304   :  { %300 = vst.msk [vmem:[%s812_s10] sm:$0xff] %vm299_vm4, %v297_v63 }
 0x366   :  { %v391_v1 = vpop.f32.mrb[0].mxu0 }
 0x367   :  { %v392_v2 = vadd.f32 %v420_v0, %v391_v1  ;;  %v526_v3 = vpop.f32.mrb[1].mxu0 }
 0x369   :  { %395 = vst.msk [vmem:[#allocation2] sm:$0xff] %vm47_vm1, %v392_v2 }
 0x36a   :  { %588 = shalt.err (!%p585_p4)
}
 0x36b   :  { %s589_s15 = scalar_lea.hbm %s811_s9, 128 }
 0x36c   :  { %p590_p5 = scmp.ne.s32.totalorder %s811_s9, %s589_s15  ;;  %p593_p6 = scmp.lt.u32.totalorder %s589_s15, %s811_s9 }
 0x36e   :  { %p595_p7 = pnand %p593_p6, %p590_p5 }
 0x370   :  { %598 = shalt.err (!%p595_p7)
}
 0x371   :  { %405 = dma.vmem_to_hbm [thread:$0]  %s403_s13, 128, %s811_s9, [#allocation3]  }
 0x372   :  { %599 = dma.done.wait [#allocation3], 128  }
 0x373   :  { %600 = vsyncadd [#allocation3], 4294967168 }
 0x374   :  { %413 = vsyncpa [#allocation3], 1 }

</bundles_post_ra>
